<compile_context>
chip_gen: v5e
topology: v5e:2x2
jax: 0.10.0
libtpu: 0.0.40
codegen_flags: <defaults>
</compile_context>

<pallas_src>
import jax
import jax.numpy as jnp
from jax.experimental import pallas as pl
from jax.experimental.pallas import tpu as pltpu


def _round_up(x, m):
    return ((x + m - 1) // m) * m


def _classifier_kernel(x_ref, w_ref, b_ref, o_ref):
    # One fused matmul on the MXU, f32 accumulate, bias add on the VPU.
    acc = jnp.dot(x_ref[...], w_ref[...], preferred_element_type=jnp.float32)
    o_ref[...] = (acc + b_ref[...]).astype(o_ref.dtype)


def classifier_forward(x, w_cls, b_cls, w_bbox, b_bbox, *, tn_max=512):
    """Pallas equivalent of Classifier.forward.

    x:      [N, C] or [N, C, 1, 1]
    w_cls:  [C, num_classes]        b_cls:  [num_classes]
    w_bbox: [C, num_classes * 4]    b_bbox: [num_classes * 4]
    returns (scores [N, num_classes], bbox_coord [N, num_classes * 4])
    """
    if x.ndim == 4:
        assert x.shape[2] == 1 and x.shape[3] == 1, "expected spatial dims == [1, 1]"
    x2d = x.reshape(x.shape[0], -1)           # x.flatten(start_dim=1)

    n, c = x2d.shape
    nc = w_cls.shape[1]
    nb = w_bbox.shape[1]
    out = nc + nb

    # Fuse the two heads and pad the output axis to a lane-dense width (x128).
    out_pad = _round_up(out, 128)
    w_fused = jnp.concatenate([w_cls, w_bbox], axis=1)
    if out_pad != out:
        w_fused = jnp.pad(w_fused, ((0, 0), (0, out_pad - out)))
    b_fused = jnp.concatenate([b_cls, b_bbox]).reshape(1, out)
    if out_pad != out:
        b_fused = jnp.pad(b_fused, ((0, 0), (0, out_pad - out)))

    # Tile the N axis. Small N: one padded tile; large N: 512-row tiles
    # (2 bufs x (tn*C + tn*out_pad) x 4B stays well under v7x scoped VMEM).
    tn = min(tn_max, _round_up(n, 8))
    n_pad = _round_up(n, tn)
    x_p = jnp.pad(x2d, ((0, n_pad - n), (0, 0))) if n_pad != n else x2d

    # TODO(synk): for v5e, optionally cast x_p/w_fused to bf16 here (keeping the
    # f32 accumulate) if the deployment tolerates the precision drop.

    fused = pl.pallas_call(
        _classifier_kernel,
        out_shape=jax.ShapeDtypeStruct((n_pad, out_pad), x2d.dtype),
        grid_spec=pltpu.PrefetchScalarGridSpec(
            num_scalar_prefetch=0,
            grid=(n_pad // tn,),
            in_specs=[
                pl.BlockSpec((tn, c), lambda i: (i, 0)),        # x tile (pipelined)
                pl.BlockSpec((c, out_pad), lambda i: (0, 0)),    # fused weight (resident)
                pl.BlockSpec((1, out_pad), lambda i: (0, 0)),    # fused bias (resident)
            ],
            out_specs=pl.BlockSpec((tn, out_pad), lambda i: (i, 0)),
        ),
        compiler_params=pltpu.CompilerParams(
            dimension_semantics=("parallel",)),
    )(x_p, w_fused, b_fused)

    scores = fused[:n, :nc]
    bbox_coord = fused[:n, nc:nc + nb]
    return scores, bbox_coord


def init_classifier_params(key, input_channel, num_classes, dtype=jnp.float32):
    """Deterministic parameter init mimicking nn.Linear's uniform(-1/sqrt(C), 1/sqrt(C))."""
    k1, k2, k3, k4 = jax.random.split(key, 4)
    bound = 1.0 / jnp.sqrt(jnp.array(input_channel, dtype=jnp.float32))
    # Stored as [in, out] (transposed relative to PyTorch's [out, in]).
    w_cls = jax.random.uniform(k1, (input_channel, num_classes), dtype, -bound, bound)
    b_cls = jax.random.uniform(k2, (num_classes,), dtype, -bound, bound)
    w_bbox = jax.random.uniform(k3, (input_channel, num_classes * 4), dtype, -bound, bound)
    b_bbox = jax.random.uniform(k4, (num_classes * 4,), dtype, -bound, bound)
    return w_cls, b_cls, w_bbox, b_bbox


if __name__ == "__main__":
    key = jax.random.PRNGKey(0)
    k_x, k_p = jax.random.split(key)

    batch = 2
    input_channel = 32
    num_classes = 8

    # 4-D input with spatial [1, 1], matching the PyTorch forward's assert path.
    x = jax.random.normal(k_x, (batch, input_channel, 1, 1), dtype=jnp.float32)

    w_cls, b_cls, w_bbox, b_bbox = init_classifier_params(k_p, input_channel, num_classes)

    scores, bbox_coord = classifier_forward(x, w_cls, b_cls, w_bbox, b_bbox)
    jax.block_until_ready((scores, bbox_coord))

    # Reference check in plain JAX.
    x2d = x.reshape(batch, -1)
    ref_scores = x2d @ w_cls + b_cls
    ref_bbox = x2d @ w_bbox + b_bbox
    assert scores.shape == (batch, num_classes)
    assert bbox_coord.shape == (batch, num_classes * 4)
    assert jnp.allclose(scores, ref_scores, atol=1e-5, rtol=1e-5)
    assert jnp.allclose(bbox_coord, ref_bbox, atol=1e-5, rtol=1e-5)

    # Also exercise a larger, multi-tile batch to check the grid path.
    big_n = 1500
    xb = jax.random.normal(k_x, (big_n, input_channel), dtype=jnp.float32)
    s2, b2 = classifier_forward(xb, w_cls, b_cls, w_bbox, b_bbox)
    jax.block_until_ready((s2, b2))
    assert jnp.allclose(s2, xb @ w_cls + b_cls, atol=1e-4, rtol=1e-4)
    assert jnp.allclose(b2, xb @ w_bbox + b_bbox, atol=1e-4, rtol=1e-4)

    print("KERNEL_OK")
</pallas_src>

<mosaic_0001>
module attributes {stable_mosaic.version = 11 : i64} {
  func.func @_classifier_kernel(%arg0: i32, %arg1: memref<8x32xf32, #tpu.memory_space<vmem>>, %arg2: memref<32x128xf32, #tpu.memory_space<vmem>>, %arg3: memref<1x128xf32, #tpu.memory_space<vmem>>, %arg4: memref<8x128xf32, #tpu.memory_space<vmem>>) attributes {dimension_semantics = [#tpu.dimension_semantics<parallel>], iteration_bounds = array<i64: 1>, scalar_prefetch = 0 : i64, scratch_operands = 0 : i64, tpu.core_type = #tpu.core_type<tc>, window_params = [{transform_indices = @transform_0, window_bounds = array<i64: 8, 32>}, {pipeline_mode = #tpu.pipeline_mode<synchronous>, transform_indices = @transform_1, window_bounds = array<i64: 32, 128>}, {pipeline_mode = #tpu.pipeline_mode<synchronous>, transform_indices = @transform_2, window_bounds = array<i64: 1, 128>}, {transform_indices = @transform_3, window_bounds = array<i64: 8, 128>}]} {
    %c0 = arith.constant 0 : index
    %c0_0 = arith.constant 0 : index
    %0 = vector.load %arg1[%c0, %c0_0] : memref<8x32xf32, #tpu.memory_space<vmem>>, vector<8x32xf32>
    %c0_1 = arith.constant 0 : index
    %c0_2 = arith.constant 0 : index
    %1 = vector.load %arg2[%c0_1, %c0_2] : memref<32x128xf32, #tpu.memory_space<vmem>>, vector<32x128xf32>
    %cst = arith.constant dense<0.000000e+00> : vector<8x128xf32>
    %2 = tpu.matmul %0, %1, %cst {dimension_numbers = #tpu.dot_dimension_numbers<[1], [0], [0], [1], [0, 0, 1, 1], [], []>} : vector<8x32xf32>, vector<32x128xf32>, vector<8x128xf32> -> vector<8x128xf32>
    %c0_3 = arith.constant 0 : index
    %c0_4 = arith.constant 0 : index
    %3 = vector.load %arg3[%c0_3, %c0_4] : memref<1x128xf32, #tpu.memory_space<vmem>>, vector<1x128xf32>
    %4 = vector.broadcast %3 : vector<1x128xf32> to vector<8x128xf32>
    %5 = arith.addf %2, %4 : vector<8x128xf32>
    %c0_5 = arith.constant 0 : index
    %c0_6 = arith.constant 0 : index
    %6 = vector.load %arg4[%c0_5, %c0_6] : memref<8x128xf32, #tpu.memory_space<vmem>>, vector<8x128xf32>
    tpu.vector_store %arg4[%c0_5, %c0_6], %5 {strides = array<i32>} : memref<8x128xf32, #tpu.memory_space<vmem>>, vector<8x128xf32>,
    return
  }
  func.func @transform_0(%arg0: i32) -> (i32, i32) {
    %c0_i32 = arith.constant 0 : i32
    %c0_i32_0 = arith.constant 0 : i32
    return %arg0, %c0_i32 : i32, i32
  }
  func.func @transform_1(%arg0: i32) -> (i32, i32) {
    %c0_i32 = arith.constant 0 : i32
    %c0_i32_0 = arith.constant 0 : i32
    %c0_i32_1 = arith.constant 0 : i32
    return %c0_i32, %c0_i32_0 : i32, i32
  }
  func.func @transform_2(%arg0: i32) -> (i32, i32) {
    %c0_i32 = arith.constant 0 : i32
    %c0_i32_0 = arith.constant 0 : i32
    %c0_i32_1 = arith.constant 0 : i32
    return %c0_i32, %c0_i32_0 : i32, i32
  }
  func.func @transform_3(%arg0: i32) -> (i32, i32) {
    %c0_i32 = arith.constant 0 : i32
    %c0_i32_0 = arith.constant 0 : i32
    return %arg0, %c0_i32 : i32, i32
  }
}

</mosaic_0001>

<bundles_post_ra>
// kernel: tpu_custom_call.1
= control target key start
LH: loop header
LB: loop body
LE: loop exit
PB: predicated region body
PF: predicated region fallthrough
CT: control target
= control target key end

     0   :  { %8 = vsyncpa [#allocation3], 0  ;;  %s219_s0 = inlined_call_operand.hbm [shape: f32[8,32], index: 0, kind: input, shape index: {}]   ;;  %s220_s1 = inlined_call_operand.hbm [shape: f32[32,128], index: 1, kind: input, shape index: {}]   ;;  %s221_s2 = inlined_call_operand.vmem [shape: f32[1,128], index: 2, kind: input, shape index: {}]   ;;  %s222_s3 = inlined_call_operand.hbm [shape: f32[8,128], index: 3, kind: output, shape index: {}]  }
   0x1   :  { %9 = vsyncpa [#allocation6], 0 }
   0x2   :  { %10 = vsyncpa [#allocation4], 0  ;;  %s16_s14 = sshll.u32 %s219_s0, 4  ;;  %s182_s15 = smov [#allocation2]   ;;  %s17_s14 = int_to_ptr.hbm [resolvable:$true] %s16_s14 }
   0x3   :  { %s18_s16 = sshll.u32 %s182_s15, 4  ;;  %s26_s19 = sshll.u32 %s220_s1, 4  ;;  %s19_s16 = int_to_ptr.vmem [resolvable:$true] %s18_s16  ;;  %s27_s19 = int_to_ptr.hbm [resolvable:$true] %s26_s19 }
   0x4   :  { %21 = dma.hbm_to_vmem [thread:$0]  %s17_s14, 128, %s19_s16, [#allocation3]  }
   0x5   :  { %s183_s20 = smov [#allocation5]   ;;  %s184_s22 = smov 128  }
   0x6   :  { %s28_s21 = sshll.u32 %s183_s20, 4  ;;  %s185_s23 = smov 8   ;;  %s29_s21 = int_to_ptr.vmem [resolvable:$true] %s28_s21 }
   0x7   :  { %34 = dma.hbm_to_vmem [thread:$0]  %s27_s19, 512, %s29_s21, [#allocation6], %s184_s22, %s184_s22, %s185_s23  }
   0x8   :  { %176 = dma.done.wait [#allocation3], 128  }
   0x9   :  { %177 = vsyncadd [#allocation3], 4294967168 }
   0xa   :  { %178 = dma.done.wait [#allocation6], 512  }
   0xb   :  { %179 = vsyncadd [#allocation6], 4294966784  ;;  %v49_v0 = vld [vmem:[#allocation5 + $0x18] sm:$0xff]  ;;  %v48_v1 = vld [vmem:[#allocation5 + $0x10] sm:$0xff]  ;;  %vm54_vm0 = vcmask 261120   ;;  %s186_s24 = smov [#allocation7]  }
   0xc   :  { %70 = vmatpush.msra.mxu0 %v49_v0  ;;  %v47_v2 = vld [vmem:[#allocation5 + $0x8] sm:$0xff]  ;;  %v46_v3 = vld [vmem:[#allocation5] sm:$0xff]  ;;  %v45_v4 = vld [vmem:[#allocation2] sm:$0xff]  ;;  %s84_s25 = sshll.u32 %s186_s24, 4  ;;  %s86_s28 = sshll.u32 %s222_s3, 4  ;;  %s85_s25 = int_to_ptr.vmem [resolvable:$true] %s84_s25  ;;  %s87_s28 = int_to_ptr.hbm [resolvable:$true] %s86_s28 }
   0xd   :  { %v103_v5 = vld [vmem:[%s221_s2] ss:$0 sm:$0xff] }
   0xe   :  { %71 = vmatpush.msra.mxu0 %v48_v1 }
  0x10   :  { %72 = vmatpush.msra.mxu0 %v47_v2 }
  0x12   :  { %73 = vmatpush.msra.mxu0 %v46_v3 }
  0x13   :  { %97 = vmatmul.msk.f32.vlgmr.msra.gmra.mxu0 %vm54_vm0, %v45_v4 }
  0x90   :  { %v75_v6 = vpop.f32.mrf.mxu0 }
  0x91   :  { %v76_v7 = vadd.f32 %v103_v5, %v75_v6 }
  0x93   :  { %78 = vst [vmem:[#allocation7] sm:$0xff] %v76_v7 }
  0x94   :  { %89 = dma.vmem_to_hbm [thread:$0]  %s85_s25, 128, %s87_s28, [#allocation4]  }
  0x95   :  { %180 = dma.done.wait [#allocation4], 128  }
  0x96   :  { %181 = vsyncadd [#allocation4], 4294967168 }
  0x97   :  { %94 = vsyncpa [#allocation3], 1 }
  0x98   :  { %95 = vsyncpa [#allocation6], 1 }
  0x99   :  { %96 = vsyncpa [#allocation4], 1 }

</bundles_post_ra>
